<compile_context>
chip_gen: v5e
topology: v5e:2x2
jax: 0.10.0
libtpu: 0.0.40
codegen_flags: <defaults>
</compile_context>

<pallas_src>
import functools

import jax
import jax.numpy as jnp
from jax.experimental import pallas as pl
from jax.experimental.pallas import tpu as pltpu

EPS = 1e-5                       # BatchNorm2d / BatchNorm1d default eps
_VMEM_LIMIT = 48 * 1024 * 1024   # <= v7x 64 MiB physical VMEM; fine on v5e/v6e


def _round_up(x, m):
    return ((x + m - 1) // m) * m


def _cpad(c):
    """All channel dims padded to a multiple of 128 -> lane-dense blocks."""
    return max(_round_up(c, 128), 128)


def _choose_bm(m):
    """M tile: whole array when small (no ragged tile), else 512 rows."""
    return m if m <= 512 else 512


def _pick_row_tile(ho, wo, cap_rows=512):
    """Largest divisor TH of Ho with TH*Wo <= cap and sublane-legal blocks."""
    best = ho
    for th in range(1, ho + 1):
        if ho % th == 0 and th * wo <= cap_rows and (th * wo % 8 == 0 or th == ho):
            best = th
    return best


# ---------------------------------------------------------------------------
# Kernels
# ---------------------------------------------------------------------------
def _matmul_stats_kernel(a_ref, b_ref, z_ref, s1_ref, s2_ref, *, bm, m_true, ragged):
    """z = a @ b (full-K bf16 MXU, f32 acc) + fused per-channel sum / sumsq.

    grid = (Cout tiles, M tiles); weight + stats blocks resident over the
    inner M axis.
    """
    i = pl.program_id(1)

    @pl.when(i == 0)
    def _init():
        s1_ref[...] = jnp.zeros_like(s1_ref)
        s2_ref[...] = jnp.zeros_like(s2_ref)

    z = jnp.dot(a_ref[...], b_ref[...], preferred_element_type=jnp.float32)
    z_ref[...] = z.astype(z_ref.dtype)
    if ragged:  # mask rows past the true M so they don't pollute the stats
        rows = jax.lax.broadcasted_iota(jnp.int32, z.shape, 0) + i * bm
        z = jnp.where(rows < m_true, z, 0.0)
    s1_ref[...] += jnp.sum(z, axis=0, keepdims=True)
    s2_ref[...] += jnp.sum(z * z, axis=0, keepdims=True)


def _conv_stats_kernel(x_ref, w_ref, z_ref, s1_ref, s2_ref, *,
                       kh, kw, stride, th, wo):
    """kxk conv over TH output rows with fused BN statistics.

    x_ref : (Hp, Wp, Cin) bf16 padded image of one batch element (resident
            across all of its row tiles).
    w_ref : (kh, kw, Cin, Cout) bf16, resident for the whole grid.
    z_ref : (TH*Wo, Cout) bf16 output rows for this tile.
    s1/s2 : (1, Cout) f32 per-channel sum / sum-of-squares (whole grid).
    """
    b = pl.program_id(0)
    t = pl.program_id(1)

    @pl.when(jnp.logical_and(b == 0, t == 0))
    def _init():
        s1_ref[...] = jnp.zeros_like(s1_ref)
        s2_ref[...] = jnp.zeros_like(s2_ref)

    acc = jnp.zeros(z_ref.shape, jnp.float32)
    for ki in range(kh):
        for kj in range(kw):
            rows = []
            for r in range(th):
                h_in = (t * th + r) * stride + ki
                if wo == 1:
                    row = x_ref[h_in, pl.ds(kj, 1), :]
                elif stride == 1:
                    row = x_ref[h_in, pl.ds(kj, wo), :]
                else:
                    row = x_ref[h_in, pl.ds(kj, wo, stride=stride), :]
                rows.append(row)
            lhs = rows[0] if th == 1 else jnp.concatenate(rows, axis=0)
            acc += jnp.dot(lhs, w_ref[ki, kj], preferred_element_type=jnp.float32)
    z_ref[...] = acc.astype(z_ref.dtype)
    s1_ref[...] += jnp.sum(acc, axis=0, keepdims=True)
    s2_ref[...] += jnp.sum(acc * acc, axis=0, keepdims=True)


def _maxpool_kernel(x_ref, o_ref, *, kh, kw, stride, th, wo):
    """3x3/2 max pool; window folded in-kernel, TH output rows per step."""
    t = pl.program_id(1)
    for r in range(th):
        h = t * th + r
        cur = None
        for ki in range(kh):
            for kj in range(kw):
                if wo == 1:
                    v = x_ref[h * stride + ki, pl.ds(kj, 1), :]
                elif stride == 1:
                    v = x_ref[h * stride + ki, pl.ds(kj, wo), :]
                else:
                    v = x_ref[h * stride + ki, pl.ds(kj, wo, stride=stride), :]
                cur = v if cur is None else jnp.maximum(cur, v)
        o_ref[r] = cur


def _bn_apply_kernel(*refs, relu, has_res):
    """y = z*scale + shift [+ residual] [ReLU]; bf16 in/out, f32 math."""
    if has_res:
        z_ref, scale_ref, shift_ref, res_ref, o_ref = refs
    else:
        z_ref, scale_ref, shift_ref, o_ref = refs
    y = z_ref[...].astype(jnp.float32) * scale_ref[...] + shift_ref[...]
    if has_res:
        y = y + res_ref[...].astype(jnp.float32)
    if relu:
        y = jnp.maximum(y, 0.0)
    o_ref[...] = y.astype(o_ref.dtype)


# ---------------------------------------------------------------------------
# pallas_call executors (jitted so identical-shape layers reuse one compile)
# ---------------------------------------------------------------------------
@functools.partial(jax.jit, static_argnames=("bm", "bn"))
def _matmul_stats_exec(a, b, *, bm, bn):
    m, k = a.shape
    n = b.shape[1]
    ragged = (m % bm) != 0
    kernel = functools.partial(_matmul_stats_kernel, bm=bm, m_true=m, ragged=ragged)
    return pl.pallas_call(
        kernel,
        out_shape=(jax.ShapeDtypeStruct((m, n), jnp.bfloat16),
                   jax.ShapeDtypeStruct((1, n), jnp.float32),
                   jax.ShapeDtypeStruct((1, n), jnp.float32)),
        grid=(n // bn, pl.cdiv(m, bm)),
        in_specs=[pl.BlockSpec((bm, k), lambda j, i: (i, 0)),
                  pl.BlockSpec((k, bn), lambda j, i: (0, j))],
        out_specs=(pl.BlockSpec((bm, bn), lambda j, i: (i, j)),
                   pl.BlockSpec((1, bn), lambda j, i: (0, j)),
                   pl.BlockSpec((1, bn), lambda j, i: (0, j))),
        compiler_params=pltpu.CompilerParams(
            dimension_semantics=("parallel", "arbitrary"),
            vmem_limit_bytes=_VMEM_LIMIT),
    )(a, b)


@functools.partial(jax.jit, static_argnames=("stride", "th"))
def _conv_stats_exec(x_pad, w4, *, stride, th):
    n, hp, wp, cin = x_pad.shape
    kh, kw, _, cout = w4.shape
    ho = (hp - kh) // stride + 1
    wo = (wp - kw) // stride + 1
    kernel = functools.partial(_conv_stats_kernel, kh=kh, kw=kw, stride=stride,
                               th=th, wo=wo)
    return pl.pallas_call(
        kernel,
        out_shape=(jax.ShapeDtypeStruct((n, ho * wo, cout), jnp.bfloat16),
                   jax.ShapeDtypeStruct((1, cout), jnp.float32),
                   jax.ShapeDtypeStruct((1, cout), jnp.float32)),
        grid=(n, ho // th),
        in_specs=[pl.BlockSpec((None, hp, wp, cin), lambda b, t: (b, 0, 0, 0)),
                  pl.BlockSpec((kh, kw, cin, cout), lambda b, t: (0, 0, 0, 0))],
        out_specs=(pl.BlockSpec((None, th * wo, cout), lambda b, t: (b, t, 0)),
                   pl.BlockSpec((1, cout), lambda b, t: (0, 0)),
                   pl.BlockSpec((1, cout), lambda b, t: (0, 0))),
        compiler_params=pltpu.CompilerParams(
            dimension_semantics=("arbitrary", "arbitrary"),
            vmem_limit_bytes=_VMEM_LIMIT),
    )(x_pad, w4)


@functools.partial(jax.jit, static_argnames=("th",))
def _maxpool_exec(x_pad, *, th):
    n, hp, wp, c = x_pad.shape
    kh = kw = 3
    stride = 2
    ho = (hp - kh) // stride + 1
    wo = (wp - kw) // stride + 1
    kernel = functools.partial(_maxpool_kernel, kh=kh, kw=kw, stride=stride,
                               th=th, wo=wo)
    return pl.pallas_call(
        kernel,
        out_shape=jax.ShapeDtypeStruct((n, ho, wo, c), jnp.bfloat16),
        grid=(n, ho // th),
        in_specs=[pl.BlockSpec((None, hp, wp, c), lambda b, t: (b, 0, 0, 0))],
        out_specs=pl.BlockSpec((None, th, wo, c), lambda b, t: (b, t, 0, 0)),
        compiler_params=pltpu.CompilerParams(
            dimension_semantics=("arbitrary", "arbitrary"),
            vmem_limit_bytes=_VMEM_LIMIT),
    )(x_pad)


@functools.partial(jax.jit, static_argnames=("bm", "relu", "has_res"))
def _bn_apply_exec(z, scale, shift, residual, *, bm, relu, has_res):
    m, c = z.shape
    kernel = functools.partial(_bn_apply_kernel, relu=relu, has_res=has_res)
    in_specs = [pl.BlockSpec((bm, c), lambda i: (i, 0)),
                pl.BlockSpec((1, c), lambda i: (0, 0)),
                pl.BlockSpec((1, c), lambda i: (0, 0))]
    args = [z, scale, shift]
    if has_res:
        in_specs.append(pl.BlockSpec((bm, c), lambda i: (i, 0)))
        args.append(residual)
    return pl.pallas_call(
        kernel,
        out_shape=jax.ShapeDtypeStruct((m, c), jnp.bfloat16),
        grid=(pl.cdiv(m, bm),),
        in_specs=in_specs,
        out_specs=pl.BlockSpec((bm, c), lambda i: (i, 0)),
        compiler_params=pltpu.CompilerParams(
            dimension_semantics=("arbitrary",),
            vmem_limit_bytes=_VMEM_LIMIT),
    )(*args)


# ---------------------------------------------------------------------------
# Layer wrappers (glue: spatial padding / reshapes / tiny scalar math only)
# ---------------------------------------------------------------------------
def _bn_scale_shift(s1, s2, gamma, beta, m):
    """Train-mode BN scale/shift from fused (sum, sumsq); biased variance."""
    mean = s1 / m
    var = jnp.maximum(s2 / m - mean * mean, 0.0)     # guard cancellation
    scale = gamma * jax.lax.rsqrt(var + EPS)
    shift = beta - mean * scale
    return scale, shift


def _linear_bn(x2d, w_mat, gamma, beta, *, relu, residual=None):
    """(M,K)@(K,Cout) with fused BN stats, then BN apply [+res][ReLU]."""
    m = x2d.shape[0]
    n = w_mat.shape[1]
    bm = _choose_bm(m)
    bn = min(512, n)
    z, s1, s2 = _matmul_stats_exec(x2d, w_mat, bm=bm, bn=bn)
    scale, shift = _bn_scale_shift(s1, s2, gamma, beta, m)
    return _bn_apply_exec(z, scale, shift, residual, bm=bm, relu=relu,
                          has_res=residual is not None)


def _conv_bn(x4, w4, gamma, beta, *, stride, relu):
    """NHWC kxk conv (pad=(k-1)//2, no bias) + train-mode BN [+ ReLU]."""
    n, h, w, _ = x4.shape
    kh, kw = w4.shape[0], w4.shape[1]
    pad = (kh - 1) // 2
    xp = jnp.pad(x4, ((0, 0), (pad, pad), (pad, pad), (0, 0)))
    ho = (h + 2 * pad - kh) // stride + 1
    wo = (w + 2 * pad - kw) // stride + 1
    th = _pick_row_tile(ho, wo)
    z3, s1, s2 = _conv_stats_exec(xp, w4, stride=stride, th=th)
    m = n * ho * wo
    cout = w4.shape[-1]
    scale, shift = _bn_scale_shift(s1, s2, gamma, beta, m)
    y = _bn_apply_exec(z3.reshape(m, cout), scale, shift, None,
                       bm=_choose_bm(m), relu=relu, has_res=False)
    return y.reshape(n, ho, wo, cout)


def _max_pool_3x3_s2_p1(x4):
    n, h, w, _ = x4.shape
    xp = jnp.pad(x4, ((0, 0), (1, 1), (1, 1), (0, 0)), constant_values=-1e30)
    ho = (h + 2 - 3) // 2 + 1
    wo = (w + 2 - 3) // 2 + 1
    return _maxpool_exec(xp, th=_pick_row_tile(ho, wo))


def _stem_conv1(x_nhwc, params):
    """conv1 7x7/2 pad 3 as one K=7*7*3(->256) im2col matmul + BN + ReLU."""
    kh = kw = 7
    stride, pad = 2, 3
    n, h, w, c = x_nhwc.shape
    xp = jnp.pad(x_nhwc, ((0, 0), (pad, pad), (pad, pad), (0, 0))).astype(jnp.bfloat16)
    ho = (h + 2 * pad - kh) // stride + 1
    wo = (w + 2 * pad - kw) // stride + 1
    cols = [xp[:, i:i + (ho - 1) * stride + 1:stride,
               j:j + (wo - 1) * stride + 1:stride, :]
            for i in range(kh) for j in range(kw)]
    k_pad = params["conv1_w"].shape[0]
    cols.append(jnp.zeros((n, ho, wo, k_pad - kh * kw * c), jnp.bfloat16))
    a = jnp.concatenate(cols, axis=-1).reshape(n * ho * wo, k_pad)
    y = _linear_bn(a, params["conv1_w"], params["bn1_g"], params["bn1_b"], relu=True)
    return y.reshape(n, ho, wo, -1)


def _bottleneck(x4, blk, *, stride, downsample):
    n, h, w, cin = x4.shape
    x2d = x4.reshape(n * h * w, cin)
    if downsample:
        # 1x1 stride-s downsample routed through the matmul path (subsample).
        xs = x4[:, ::stride, ::stride, :] if stride > 1 else x4
        identity = _linear_bn(xs.reshape(-1, cin), blk["wd"], blk["gd"], blk["bd"],
                              relu=False)
    else:
        identity = x2d
    out = _linear_bn(x2d, blk["w1"], blk["g1"], blk["b1"], relu=True)
    out = _conv_bn(out.reshape(n, h, w, -1), blk["w2"], blk["g2"], blk["b2"],
                   stride=stride, relu=True)
    no, ho, wo, cmid = out.shape
    # bn3 + residual add + final ReLU fused into the BN-apply kernel.
    out = _linear_bn(out.reshape(no * ho * wo, cmid), blk["w3"], blk["g3"],
                     blk["b3"], relu=True, residual=identity)
    return out.reshape(n, ho, wo, -1)


def encoder_cnn_forward(params, images_nchw):
    # resnet50 children()[:-1]: conv1/bn1/relu, maxpool, layer1..4, avgpool.
    x = jnp.transpose(images_nchw, (0, 2, 3, 1))     # single NCHW->NHWC change
    x = _stem_conv1(x, params)
    x = _max_pool_3x3_s2_p1(x)
    for layer in params["layers"]:
        for bi, blk in enumerate(layer["blocks"]):
            x = _bottleneck(x, blk, stride=layer["stride"] if bi == 0 else 1,
                            downsample=(bi == 0))
    # AdaptiveAvgPool2d((1,1)) + view(N, -1): spatial mean (trivial XLA glue).
    feats = x.astype(jnp.float32).mean(axis=(1, 2))                  # (N, 2048)
    # Linear(2048, E): bias cancels exactly under train-mode BatchNorm1d.
    z = _linear_bn(feats.astype(jnp.bfloat16), params["embed_w"],
                   params["bn_g"], params["bn_b"], relu=False)
    return z[:, :params["embed_size"]].astype(jnp.float32)


# ---------------------------------------------------------------------------
# Deterministic parameter init (ResNet-50 shapes, synthetic values), with all
# channel dims zero-padded to multiples of 128 once, at prep time.
# ---------------------------------------------------------------------------
def init_params(key, embed_size):
    ks = iter(jax.random.split(key, 512))

    def conv1x1(cin, cout):
        w = 0.05 * jax.random.normal(next(ks), (cout, cin), jnp.float32)
        wm = jnp.zeros((_cpad(cin), _cpad(cout)), jnp.float32)
        return wm.at[:cin, :cout].set(w.T).astype(jnp.bfloat16)

    def conv3x3(cin, cout):
        w = 0.05 * jax.random.normal(next(ks), (cout, cin, 3, 3), jnp.float32)
        w4 = jnp.zeros((3, 3, _cpad(cin), _cpad(cout)), jnp.float32)
        return w4.at[:, :, :cin, :cout].set(
            jnp.transpose(w, (2, 3, 1, 0))).astype(jnp.bfloat16)

    def bn_p(c):
        g = 1.0 + 0.1 * jax.random.normal(next(ks), (c,), jnp.float32)
        b = 0.1 * jax.random.normal(next(ks), (c,), jnp.float32)
        cp = _cpad(c)
        return (jnp.zeros((1, cp), jnp.float32).at[0, :c].set(g),
                jnp.zeros((1, cp), jnp.float32).at[0, :c].set(b))

    params = {}
    # conv1 stored directly as its im2col weight matrix (147 -> 256, 64 -> 128).
    w = 0.05 * jax.random.normal(next(ks), (64, 3, 7, 7), jnp.float32)
    wcol = jnp.transpose(w, (2, 3, 1, 0)).reshape(7 * 7 * 3, 64)
    params["conv1_w"] = (jnp.zeros((256, 128), jnp.float32)
                         .at[:147, :64].set(wcol).astype(jnp.bfloat16))
    params["bn1_g"], params["bn1_b"] = bn_p(64)

    layers = []
    in_ch = 64
    for (n_blocks, mid, out, stride) in ((3, 64, 256, 1), (4, 128, 512, 2),
                                         (6, 256, 1024, 2), (3, 512, 2048, 2)):
        blocks = []
        for bi in range(n_blocks):
            blk = {"w1": conv1x1(in_ch, mid)}
            blk["g1"], blk["b1"] = bn_p(mid)
            blk["w2"] = conv3x3(mid, mid)
            blk["g2"], blk["b2"] = bn_p(mid)
            blk["w3"] = conv1x1(mid, out)
            blk["g3"], blk["b3"] = bn_p(out)
            if bi == 0:
                blk["wd"] = conv1x1(in_ch, out)
                blk["gd"], blk["bd"] = bn_p(out)
            blocks.append(blk)
            in_ch = out
        layers.append({"blocks": blocks, "stride": stride})
    params["layers"] = layers

    w = 0.02 * jax.random.normal(next(ks), (embed_size, 2048), jnp.float32)
    params["embed_w"] = (jnp.zeros((2048, _cpad(embed_size)), jnp.float32)
                         .at[:, :embed_size].set(w.T).astype(jnp.bfloat16))
    params["bn_g"], params["bn_b"] = bn_p(embed_size)
    params["embed_size"] = embed_size
    return params


if __name__ == "__main__":
    key = jax.random.PRNGKey(0)
    pkey, xkey = jax.random.split(key)
    embed_size = 32
    params = init_params(pkey, embed_size)
    images = jax.random.normal(xkey, (2, 3, 16, 16), jnp.float32)  # NCHW

    feats = encoder_cnn_forward(params, images)
    feats = jax.block_until_ready(feats)

    assert feats.shape == (2, embed_size), feats.shape
    assert bool(jnp.all(jnp.isfinite(feats)))
    print("KERNEL_OK")
</pallas_src>

<mosaic_0001>
module attributes {stable_mosaic.version = 11 : i64} {
  func.func @_matmul_stats_kernel(%arg0: i32, %arg1: i32, %arg2: memref<128x256xbf16, #tpu.memory_space<vmem>>, %arg3: memref<256x128xbf16, #tpu.memory_space<vmem>>, %arg4: memref<128x128xbf16, #tpu.memory_space<vmem>>, %arg5: memref<1x128xf32, #tpu.memory_space<vmem>>, %arg6: memref<1x128xf32, #tpu.memory_space<vmem>>) attributes {dimension_semantics = [#tpu.dimension_semantics<parallel>, #tpu.dimension_semantics<arbitrary>], iteration_bounds = array<i64: 1, 1>, scalar_prefetch = 0 : i64, scratch_operands = 0 : i64, tpu.core_type = #tpu.core_type<tc>, window_params = [{transform_indices = @transform_0, window_bounds = array<i64: 128, 256>}, {transform_indices = @transform_1, window_bounds = array<i64: 256, 128>}, {transform_indices = @transform_2, window_bounds = array<i64: 128, 128>}, {transform_indices = @transform_3, window_bounds = array<i64: 1, 128>}, {transform_indices = @transform_4, window_bounds = array<i64: 1, 128>}]} {
    %c0_i32 = arith.constant 0 : i32
    %0 = arith.cmpi eq, %arg1, %c0_i32 : i32
    %1 = arith.extui %0 : i1 to i32
    %c0_i32_0 = arith.constant 0 : i32
    %2 = arith.cmpi ne, %1, %c0_i32_0 : i32
    scf.if %2 {
      %cst_16 = arith.constant 0.000000e+00 : f32
      %19 = vector.broadcast %cst_16 : f32 to vector<1x128xf32>
      %c0_17 = arith.constant 0 : index
      %c0_18 = arith.constant 0 : index
      %20 = vector.load %arg5[%c0_17, %c0_18] : memref<1x128xf32, #tpu.memory_space<vmem>>, vector<1x128xf32>
      tpu.vector_store %arg5[%c0_17, %c0_18], %19 {strides = array<i32>} : memref<1x128xf32, #tpu.memory_space<vmem>>, vector<1x128xf32>,
      %cst_19 = arith.constant 0.000000e+00 : f32
      %21 = vector.broadcast %cst_19 : f32 to vector<1x128xf32>
      %c0_20 = arith.constant 0 : index
      %c0_21 = arith.constant 0 : index
      %22 = vector.load %arg6[%c0_20, %c0_21] : memref<1x128xf32, #tpu.memory_space<vmem>>, vector<1x128xf32>
      tpu.vector_store %arg6[%c0_20, %c0_21], %21 {strides = array<i32>} : memref<1x128xf32, #tpu.memory_space<vmem>>, vector<1x128xf32>,
    } else {
    }
    %c0 = arith.constant 0 : index
    %c0_1 = arith.constant 0 : index
    %3 = vector.load %arg2[%c0, %c0_1] : memref<128x256xbf16, #tpu.memory_space<vmem>>, vector<128x256xbf16>
    %c0_2 = arith.constant 0 : index
    %c0_3 = arith.constant 0 : index
    %4 = vector.load %arg3[%c0_2, %c0_3] : memref<256x128xbf16, #tpu.memory_space<vmem>>, vector<256x128xbf16>
    %cst = arith.constant dense<0.000000e+00> : vector<128x128xf32>
    %5 = tpu.matmul %3, %4, %cst {dimension_numbers = #tpu.dot_dimension_numbers<[1], [0], [0], [1], [0, 0, 1, 1], [], []>} : vector<128x256xbf16>, vector<256x128xbf16>, vector<128x128xf32> -> vector<128x128xf32>
    %6 = arith.truncf %5 : vector<128x128xf32> to vector<128x128xbf16>
    %c0_4 = arith.constant 0 : index
    %c0_5 = arith.constant 0 : index
    %7 = vector.load %arg4[%c0_4, %c0_5] : memref<128x128xbf16, #tpu.memory_space<vmem>>, vector<128x128xbf16>
    tpu.vector_store %arg4[%c0_4, %c0_5], %6 {strides = array<i32>} : memref<128x128xbf16, #tpu.memory_space<vmem>>, vector<128x128xbf16>,
    %c0_6 = arith.constant 0 : index
    %c0_7 = arith.constant 0 : index
    %8 = vector.load %arg5[%c0_6, %c0_7] : memref<1x128xf32, #tpu.memory_space<vmem>>, vector<1x128xf32>
    %cst_8 = arith.constant dense<0.000000e+00> : vector<128xf32>
    %9 = vector.multi_reduction <add>, %5, %cst_8 [0] : vector<128x128xf32> to vector<128xf32>
    %10 = vector.shape_cast %9 : vector<128xf32> to vector<1x128xf32>
    %11 = arith.addf %8, %10 : vector<1x128xf32>
    %c0_9 = arith.constant 0 : index
    %c0_10 = arith.constant 0 : index
    %12 = vector.load %arg5[%c0_9, %c0_10] : memref<1x128xf32, #tpu.memory_space<vmem>>, vector<1x128xf32>
    tpu.vector_store %arg5[%c0_9, %c0_10], %11 {strides = array<i32>} : memref<1x128xf32, #tpu.memory_space<vmem>>, vector<1x128xf32>,
    %c0_11 = arith.constant 0 : index
    %c0_12 = arith.constant 0 : index
    %13 = vector.load %arg6[%c0_11, %c0_12] : memref<1x128xf32, #tpu.memory_space<vmem>>, vector<1x128xf32>
    %14 = arith.mulf %5, %5 : vector<128x128xf32>
    %cst_13 = arith.constant dense<0.000000e+00> : vector<128xf32>
    %15 = vector.multi_reduction <add>, %14, %cst_13 [0] : vector<128x128xf32> to vector<128xf32>
    %16 = vector.shape_cast %15 : vector<128xf32> to vector<1x128xf32>
    %17 = arith.addf %13, %16 : vector<1x128xf32>
    %c0_14 = arith.constant 0 : index
    %c0_15 = arith.constant 0 : index
    %18 = vector.load %arg6[%c0_14, %c0_15] : memref<1x128xf32, #tpu.memory_space<vmem>>, vector<1x128xf32>
    tpu.vector_store %arg6[%c0_14, %c0_15], %17 {strides = array<i32>} : memref<1x128xf32, #tpu.memory_space<vmem>>, vector<1x128xf32>,
    return
  }
  func.func @transform_0(%arg0: i32, %arg1: i32) -> (i32, i32) {
    %c0_i32 = arith.constant 0 : i32
    %c0_i32_0 = arith.constant 0 : i32
    return %arg1, %c0_i32 : i32, i32
  }
  func.func @transform_1(%arg0: i32, %arg1: i32) -> (i32, i32) {
    %c0_i32 = arith.constant 0 : i32
    %c0_i32_0 = arith.constant 0 : i32
    return %c0_i32, %arg0 : i32, i32
  }
  func.func @transform_2(%arg0: i32, %arg1: i32) -> (i32, i32) {
    %c0_i32 = arith.constant 0 : i32
    return %arg1, %arg0 : i32, i32
  }
  func.func @transform_3(%arg0: i32, %arg1: i32) -> (i32, i32) {
    %c0_i32 = arith.constant 0 : i32
    %c0_i32_0 = arith.constant 0 : i32
    return %c0_i32, %arg0 : i32, i32
  }
  func.func @transform_4(%arg0: i32, %arg1: i32) -> (i32, i32) {
    %c0_i32 = arith.constant 0 : i32
    %c0_i32_0 = arith.constant 0 : i32
    return %c0_i32, %arg0 : i32, i32
  }
}

</mosaic_0001>

<bundles_post_ra>
// kernel: _matmul_stats_exec.1
= control target key start
LH: loop header
LB: loop body
LE: loop exit
PB: predicated region body
PF: predicated region fallthrough
CT: control target
= control target key end

     0   :  { %10 = vsyncpa [#allocation3], 0  ;;  %s970_s0 = inlined_call_operand.hbm [shape: bf16[128,256], index: 0, kind: input, shape index: {}]   ;;  %s971_s1 = inlined_call_operand.hbm [shape: bf16[256,128], index: 1, kind: input, shape index: {}]   ;;  %s972_s2 = inlined_call_operand.hbm [shape: bf16[128,128], index: 2, kind: output, shape index: {0}]   ;;  %s973_s3 = inlined_call_operand.hbm [shape: f32[1,128], index: 3, kind: output, shape index: {1}]   ;;  %s974_s4 = inlined_call_operand.hbm [shape: f32[1,128], index: 4, kind: output, shape index: {2}]  }
   0x1   :  { %11 = vsyncpa [#allocation6], 0 }
   0x2   :  { %12 = vsyncpa [#allocation4], 0 }
   0x3   :  { %13 = vsyncpa [#allocation9], 0  ;;  %s18_s17 = sshll.u32 %s970_s0, 4  ;;  %s884_s18 = smov [#allocation2]   ;;  %s19_s17 = int_to_ptr.hbm [resolvable:$true] %s18_s17 }
   0x4   :  { %s20_s19 = sshll.u32 %s884_s18, 4  ;;  %s31_s22 = sshll.u32 %s971_s1, 4  ;;  %s21_s19 = int_to_ptr.vmem [resolvable:$true] %s20_s19  ;;  %s32_s22 = int_to_ptr.hbm [resolvable:$true] %s31_s22 }
   0x5   :  { %s885_s23 = smov 128   ;;  %s886_s24 = smov 8  }
   0x6   :  { %26 = dma.hbm_to_vmem [thread:$0]  %s19_s17, 2048, %s21_s19, [#allocation3], %s885_s23, %s885_s23, %s886_s24  }
   0x7   :  { %s887_s25 = smov [#allocation5]   ;;  %s888_s27 = smov 64  }
   0x8   :  { %s33_s26 = sshll.u32 %s887_s25, 4  ;;  %s889_s28 = smov 4   ;;  %s34_s26 = int_to_ptr.vmem [resolvable:$true] %s33_s26 }
   0x9   :  { %39 = dma.hbm_to_vmem [thread:$0]  %s32_s22, 2048, %s34_s26, [#allocation6], %s888_s27, %s888_s27, %s889_s28  }
   0xa   :  { %876 = dma.done.wait [#allocation3], 2048  }
   0xb   :  { %877 = vsyncadd [#allocation3], 4294965248 }
   0xc   :  { %878 = dma.done.wait [#allocation6], 2048  }
   0xd   :  { %879 = vsyncadd [#allocation6], 4294965248  ;;  %v674_v0 = vld [vmem:[#allocation5 + $0x38] sm:$0xff]  ;;  %v673_v2 = vld [vmem:[#allocation5 + $0x30] sm:$0xff]  ;;  %s891_s0 = smov [#allocation7]   ;;  %s478_s5 = sshll.u32 %s972_s2, 4  ;;  %s479_s5 = int_to_ptr.hbm [resolvable:$true] %s478_s5 }
   0xe   :  { %v682_v1 = vld [vmem:[#allocation5 + $0x78] sm:$0xff]  ;;  %278 = vmatpush.bf16.msra.mxu0 %v674_v0  ;;  %v681_v3 = vld [vmem:[#allocation5 + $0x70] sm:$0xff]  ;;  %730 = vmatpush.bf16.msra.mxu2 %v674_v0  ;;  %v672_v4 = vld [vmem:[#allocation5 + $0x28] sm:$0xff]  ;;  %s476_s1 = sshll.u32 %s891_s0, 4  ;;  %s892_s2 = smov [#allocation8]   ;;  %s477_s1 = int_to_ptr.vmem [resolvable:$true] %s476_s1 }
   0xf   :  { %327 = vmatpush.bf16.msra.mxu1 %v682_v1  ;;  %738 = vmatpush.bf16.msra.mxu3 %v682_v1  ;;  %v680_v5 = vld [vmem:[#allocation5 + $0x68] sm:$0xff]  ;;  %v671_v6 = vld [vmem:[#allocation5 + $0x20] sm:$0xff]  ;;  %v670_v8 = vld [vmem:[#allocation5 + $0x18] sm:$0xff]  ;;  %s490_s6 = sshll.u32 %s892_s2, 4  ;;  %s492_s9 = sshll.u32 %s973_s3, 4  ;;  %s491_s6 = int_to_ptr.vmem [resolvable:$true] %s490_s6  ;;  %s493_s9 = int_to_ptr.hbm [resolvable:$true] %s492_s9 }
  0x10   :  { %v679_v7 = vld [vmem:[#allocation5 + $0x60] sm:$0xff]  ;;  %v678_v9 = vld [vmem:[#allocation5 + $0x58] sm:$0xff]  ;;  %v669_v10 = vld [vmem:[#allocation5 + $0x10] sm:$0xff]  ;;  %s893_s10 = smov [#allocation10]   ;;  %s503_s14 = sshll.u32 %s974_s4, 4  ;;  %s504_s14 = int_to_ptr.hbm [resolvable:$true] %s503_s14 }
  0x11   :  { %v677_v11 = vld [vmem:[#allocation5 + $0x50] sm:$0xff]  ;;  %v668_v12 = vld [vmem:[#allocation5 + $0x8] sm:$0xff]  ;;  %v667_v14 = vld [vmem:[#allocation5] sm:$0xff]  ;;  %s501_s11 = sshll.u32 %s893_s10, 4  ;;  %s502_s11 = int_to_ptr.vmem [resolvable:$true] %s501_s11 }
  0x12   :  { %279 = vmatpush.bf16.msra.mxu0 %v673_v2  ;;  %731 = vmatpush.bf16.msra.mxu2 %v673_v2  ;;  %v676_v13 = vld [vmem:[#allocation5 + $0x48] sm:$0xff]  ;;  %v675_v15 = vld [vmem:[#allocation5 + $0x40] sm:$0xff]  ;;  %v533_v28 = vld [vmem:[#allocation2 + $0x10] sm:$0xf] }
  0x13   :  { %328 = vmatpush.bf16.msra.mxu1 %v681_v3  ;;  %739 = vmatpush.bf16.msra.mxu3 %v681_v3  ;;  %v525_v16 = vld [vmem:[#allocation2] sm:$0xf]  ;;  %v652_v17 = vld [vmem:[#allocation2 + $0x4] sm:$0xf0]  ;;  %v651_v18 = vld [vmem:[#allocation2 + $0x4] sm:$0xf] }
  0x14   :  { %v527_v19 = vld [vmem:[#allocation2 + $0x8] sm:$0xf0]  ;;  %v557_v20 = vld [vmem:[#allocation2 + $0x40] sm:$0xf]  ;;  %v660_v21 = vld [vmem:[#allocation2 + $0x44] sm:$0xf0]  ;;  %v526_v24 = vor.u32 %v652_v17, %v525_v16 }
  0x15   :  { %v659_v22 = vld [vmem:[#allocation2 + $0x44] sm:$0xf]  ;;  %v559_v23 = vld [vmem:[#allocation2 + $0x48] sm:$0xf0]  ;;  %v530_v25 = vor.u32 %v651_v18, %v527_v19  ;;  %v558_v26 = vor.u32 %v660_v21, %v557_v20  ;;  %v654_v29 = vld [vmem:[#allocation2 + $0x14] sm:$0xf0] }
  0x16   :  { %280 = vmatpush.bf16.msra.mxu0 %v672_v4  ;;  %732 = vmatpush.bf16.msra.mxu2 %v672_v4  ;;  %v562_v27 = vor.u32 %v659_v22, %v559_v23  ;;  %v653_v30 = vld [vmem:[#allocation2 + $0x14] sm:$0xf]  ;;  %v535_v31 = vld [vmem:[#allocation2 + $0x18] sm:$0xf0]  ;;  %v565_v32 = vld [vmem:[#allocation2 + $0x50] sm:$0xf]  ;;  %v534_v36 = vor.u32 %v654_v29, %v533_v28 }
  0x17   :  { %329 = vmatpush.bf16.msra.mxu1 %v680_v5  ;;  %740 = vmatpush.bf16.msra.mxu3 %v680_v5  ;;  %v662_v33 = vld [vmem:[#allocation2 + $0x54] sm:$0xf0]  ;;  %v661_v34 = vld [vmem:[#allocation2 + $0x54] sm:$0xf]  ;;  %v567_v35 = vld [vmem:[#allocation2 + $0x58] sm:$0xf0]  ;;  %v538_v37 = vor.u32 %v653_v30, %v535_v31 }
  0x18   :  { %v566_v38 = vor.u32 %v662_v33, %v565_v32  ;;  %v570_v39 = vor.u32 %v661_v34, %v567_v35  ;;  %v541_v40 = vld [vmem:[#allocation2 + $0x20] sm:$0xf]  ;;  %v656_v41 = vld [vmem:[#allocation2 + $0x24] sm:$0xf0]  ;;  %v655_v42 = vld [vmem:[#allocation2 + $0x24] sm:$0xf] }
  0x19   :  { %v543_v43 = vld [vmem:[#allocation2 + $0x28] sm:$0xf0]  ;;  %v573_v44 = vld [vmem:[#allocation2 + $0x60] sm:$0xf]  ;;  %v664_v45 = vld [vmem:[#allocation2 + $0x64] sm:$0xf0]  ;;  %v542_v48 = vor.u32 %v656_v41, %v541_v40 }
  0x1a   :  { %281 = vmatpush.bf16.msra.mxu0 %v671_v6  ;;  %733 = vmatpush.bf16.msra.mxu2 %v671_v6  ;;  %v663_v46 = vld [vmem:[#allocation2 + $0x64] sm:$0xf]  ;;  %v575_v47 = vld [vmem:[#allocation2 + $0x68] sm:$0xf0]  ;;  %v546_v49 = vor.u32 %v655_v42, %v543_v43  ;;  %v574_v50 = vor.u32 %v664_v45, %v573_v44  ;;  %v549_v52 = vld [vmem:[#allocation2 + $0x30] sm:$0xf] }
  0x1b   :  { %330 = vmatpush.bf16.msra.mxu1 %v679_v7  ;;  %741 = vmatpush.bf16.msra.mxu3 %v679_v7  ;;  %v578_v51 = vor.u32 %v663_v46, %v575_v47  ;;  %v658_v53 = vld [vmem:[#allocation2 + $0x34] sm:$0xf0]  ;;  %v657_v54 = vld [vmem:[#allocation2 + $0x34] sm:$0xf]  ;;  %v551_v55 = vld [vmem:[#allocation2 + $0x38] sm:$0xf0] }
  0x1c   :  { %v581_v56 = vld [vmem:[#allocation2 + $0x70] sm:$0xf]  ;;  %v666_v57 = vld [vmem:[#allocation2 + $0x74] sm:$0xf0]  ;;  %v665_v58 = vld [vmem:[#allocation2 + $0x74] sm:$0xf]  ;;  %v550_v60 = vor.u32 %v658_v53, %v549_v52  ;;  %v554_v61 = vor.u32 %v657_v54, %v551_v55 }
  0x1d   :  { %v583_v59 = vld [vmem:[#allocation2 + $0x78] sm:$0xf0]  ;;  %v582_v62 = vor.u32 %v666_v57, %v581_v56 }
  0x1e   :  { %282 = vmatpush.bf16.msra.mxu0 %v670_v8  ;;  %734 = vmatpush.bf16.msra.mxu2 %v670_v8  ;;  %v586_v63 = vor.u32 %v665_v58, %v583_v59 }
  0x1f   :  { %331 = vmatpush.bf16.msra.mxu1 %v678_v9  ;;  %742 = vmatpush.bf16.msra.mxu3 %v678_v9 }
  0x22   :  { %283 = vmatpush.bf16.msra.mxu0 %v669_v10  ;;  %735 = vmatpush.bf16.msra.mxu2 %v669_v10 }
  0x23   :  { %332 = vmatpush.bf16.msra.mxu1 %v677_v11  ;;  %743 = vmatpush.bf16.msra.mxu3 %v677_v11 }
  0x26   :  { %284 = vmatpush.bf16.msra.mxu0 %v668_v12  ;;  %736 = vmatpush.bf16.msra.mxu2 %v668_v12 }
  0x27   :  { %333 = vmatpush.bf16.msra.mxu1 %v676_v13  ;;  %744 = vmatpush.bf16.msra.mxu3 %v676_v13 }
  0x2a   :  { %285 = vmatpush.bf16.msra.mxu0 %v667_v14  ;;  %737 = vmatpush.bf16.msra.mxu2 %v667_v14 }
  0x2b   :  { %334 = vmatpush.bf16.msra.mxu1 %v675_v15  ;;  %745 = vmatpush.bf16.msra.mxu3 %v675_v15 }
  0x2d   :  { %286 = vmatmul.bf16.vlgmr.msra.gmra.mxu0 %v526_v24  ;;  %306 = vmatmul.bf16.vlgmr.msra.gmra.mxu2 %v558_v26 }
  0x2e   :  { %335 = vmatmul.bf16.vlgmr.msra.gmra.mxu1 %v530_v25  ;;  %355 = vmatmul.bf16.vlgmr.msra.gmra.mxu3 %v562_v27 }
  0x3d   :  { %291 = vmatmul.bf16.gmra.mxu0 %v534_v36  ;;  %311 = vmatmul.bf16.gmra.mxu2 %v566_v38 }
  0x3e   :  { %340 = vmatmul.bf16.gmra.mxu1 %v538_v37  ;;  %360 = vmatmul.bf16.gmra.mxu3 %v570_v39 }
  0x4d   :  { %296 = vmatmul.bf16.gmra.mxu0 %v542_v48  ;;  %316 = vmatmul.bf16.gmra.mxu2 %v574_v50  ;;  %v890_v50 = vmov 0.0  }
  0x4e   :  { %345 = vmatmul.bf16.gmra.mxu1 %v546_v49  ;;  %365 = vmatmul.bf16.gmra.mxu3 %v578_v51  ;;  %52 = vst [vmem:[#allocation8] sm:$0x1] %v890_v50 }
  0x4f   :  { %53 = vst [vmem:[#allocation10] sm:$0x1] %v890_v50 }
  0x5d   :  { %301 = vmatmul.bf16.gmra.mxu0 %v550_v60  ;;  %321 = vmatmul.bf16.gmra.mxu2 %v582_v62 }
  0x5e   :  { %350 = vmatmul.bf16.gmra.mxu1 %v554_v61  ;;  %370 = vmatmul.bf16.gmra.mxu3 %v586_v63 }
  0xaa   :  { %v287_v0 = vpop.f32.mrf.mxu0 }
  0xab   :  { %v336_v1 = vpop.f32.mrf.mxu1 }
  0xac   :  { %v337_v6 = vadd.f32 %v336_v1, %v287_v0 }
  0xae   :  { %v433_v39 = vmul.f32 %v337_v6, %v337_v6 }
  0xb0   :  { %v307_v2 = vpop.f32.mrf.mxu2 }
  0xb1   :  { %v356_v3 = vpop.f32.mrf.mxu3 }
  0xb2   :  { %v289_v4 = vpop.f32.mrf.mxu0  ;;  %v928_v9 = vadd.f32 %v356_v3, %v307_v2 }
  0xb3   :  { %v338_v5 = vpop.f32.mrf.mxu1 }
  0xb4   :  { %v339_v7 = vadd.f32 %v338_v5, %v289_v4 }
  0xb6   :  { %v686_v8 = vpack.c.bf16 %v339_v7, %v337_v6  ;;  %v434_v37 = vmul.f32 %v339_v7, %v339_v7  ;;  %v409_v40 = vadd.f32 %v339_v7, %v337_v6 }
  0xb8   :  { %687 = vst [vmem:[#allocation7] sm:$0xff] %v686_v8   ;;  %v309_v10 = vpop.f32.mrf.mxu2  ;;  %v449_v47 = vadd.f32 %v434_v37, %v433_v39 }
  0xb9   :  { %v358_v11 = vpop.f32.mrf.mxu3 }
  0xba   :  { %v292_v12 = vpop.f32.mrf.mxu0  ;;  %v930_v14 = vadd.f32 %v358_v11, %v309_v10  ;;  %v441_v10 = vmul.f32 %v928_v9, %v928_v9 }
  0xbb   :  { %v341_v13 = vpop.f32.mrf.mxu1 }
  0xbc   :  { %v706_v15 = vpack.c.bf16 %v930_v14, %v928_v9  ;;  %v342_v20 = vadd.f32 %v341_v13, %v292_v12 }
  0xbe   :  { %726 = vst [vmem:[#allocation7 + $0x20] sm:$0xff] %v706_v15   ;;  %v435_v41 = vmul.f32 %v342_v20, %v342_v20  ;;  %v410_v48 = vadd.f32 %v409_v40, %v342_v20  ;;  %v442_v15 = vmul.f32 %v930_v14, %v930_v14 }
  0xc0   :  { %v312_v16 = vpop.f32.mrf.mxu2  ;;  %v450_v52 = vadd.f32 %v449_v47, %v435_v41 }
  0xc1   :  { %v361_v17 = vpop.f32.mrf.mxu3 }
  0xc2   :  { %v294_v18 = vpop.f32.mrf.mxu0  ;;  %v934_v23 = vadd.f32 %v361_v17, %v312_v16 }
  0xc3   :  { %v343_v19 = vpop.f32.mrf.mxu1 }
  0xc4   :  { %v344_v21 = vadd.f32 %v343_v19, %v294_v18 }
  0xc6   :  { %v691_v22 = vpack.c.bf16 %v344_v21, %v342_v20  ;;  %v436_v49 = vmul.f32 %v344_v21, %v344_v21  ;;  %v411_v53 = vadd.f32 %v410_v48, %v344_v21 }
  0xc8   :  { %723 = vst [vmem:[#allocation7 + $0x8] sm:$0xff] %v691_v22   ;;  %v314_v24 = vpop.f32.mrf.mxu2  ;;  %v451_v56 = vadd.f32 %v450_v52, %v436_v49  ;;  %v408_v49 = vld [vmem:[#allocation8] sm:$0x1] }
  0xc9   :  { %v363_v25 = vpop.f32.mrf.mxu3 }
  0xca   :  { %v297_v26 = vpop.f32.mrf.mxu0  ;;  %v936_v28 = vadd.f32 %v363_v25, %v314_v24 }
  0xcb   :  { %v346_v27 = vpop.f32.mrf.mxu1 }
  0xcc   :  { %v711_v29 = vpack.c.bf16 %v936_v28, %v934_v23  ;;  %v347_v34 = vadd.f32 %v346_v27, %v297_v26 }
  0xce   :  { %727 = vst [vmem:[#allocation7 + $0x28] sm:$0xff] %v711_v29   ;;  %v437_v54 = vmul.f32 %v347_v34, %v347_v34  ;;  %v412_v57 = vadd.f32 %v411_v53, %v347_v34 }
  0xd0   :  { %v317_v30 = vpop.f32.mrf.mxu2  ;;  %v452_v59 = vadd.f32 %v451_v56, %v437_v54 }
  0xd1   :  { %v366_v31 = vpop.f32.mrf.mxu3 }
  0xd2   :  { %v299_v32 = vpop.f32.mrf.mxu0  ;;  %v940_v38 = vadd.f32 %v366_v31, %v317_v30 }
  0xd3   :  { %v348_v33 = vpop.f32.mrf.mxu1 }
  0xd4   :  { %v349_v35 = vadd.f32 %v348_v33, %v299_v32  ;;  %v445_v27 = vmul.f32 %v940_v38, %v940_v38 }
  0xd6   :  { %v696_v36 = vpack.c.bf16 %v349_v35, %v347_v34  ;;  %v438_v58 = vmul.f32 %v349_v35, %v349_v35  ;;  %v413_v60 = vadd.f32 %v412_v57, %v349_v35 }
  0xd8   :  { %724 = vst [vmem:[#allocation7 + $0x10] sm:$0xff] %v696_v36   ;;  %v319_v42 = vpop.f32.mrf.mxu2  ;;  %v453_v2 = vadd.f32 %v452_v59, %v438_v58 }
  0xd9   :  { %v368_v43 = vpop.f32.mrf.mxu3 }
  0xda   :  { %v302_v44 = vpop.f32.mrf.mxu0  ;;  %v369_v46 = vadd.f32 %v368_v43, %v319_v42 }
  0xdb   :  { %v351_v45 = vpop.f32.mrf.mxu1 }
  0xdc   :  { %v716_v51 = vpack.c.bf16 %v369_v46, %v940_v38  ;;  %v352_v55 = vadd.f32 %v351_v45, %v302_v44 }
  0xde   :  { %728 = vst [vmem:[#allocation7 + $0x30] sm:$0xff] %v716_v51   ;;  %v439_v61 = vmul.f32 %v352_v55, %v352_v55  ;;  %v414_v3 = vadd.f32 %v413_v60, %v352_v55  ;;  %v432_v51 = vld [vmem:[#allocation10] sm:$0x1] }
  0xe0   :  { %v322_v62 = vpop.f32.mrf.mxu2  ;;  %v454_v5 = vadd.f32 %v453_v2, %v439_v61 }
  0xe1   :  { %v371_v63 = vpop.f32.mrf.mxu3 }
  0xe2   :  { %v304_v0 = vpop.f32.mrf.mxu0  ;;  %v372_v13 = vadd.f32 %v371_v63, %v322_v62 }
  0xe3   :  { %v353_v1 = vpop.f32.mrf.mxu1 }
  0xe4   :  { %v354_v4 = vadd.f32 %v353_v1, %v304_v0  ;;  %v447_v34 = vmul.f32 %v372_v13, %v372_v13 }
  0xe6   :  { %v701_v6 = vpack.c.bf16 %v354_v4, %v352_v55  ;;  %v415_v7 = vadd.f32 %v414_v3, %v354_v4  ;;  %v440_v8 = vmul.f32 %v354_v4, %v354_v4 }
  0xe8   :  { %725 = vst [vmem:[#allocation7 + $0x18] sm:$0xff] %v701_v6   ;;  %v416_v11 = vadd.f32 %v415_v7, %v928_v9  ;;  %v455_v12 = vadd.f32 %v454_v5, %v440_v8  ;;  %v324_v18 = vpop.f32.mrf.mxu2  ;;  %v443_v9 = vmul.f32 %v934_v23, %v934_v23 }
  0xe9   :  { %v373_v19 = vpop.f32.mrf.mxu3 }
  0xea   :  { %v417_v16 = vadd.f32 %v416_v11, %v930_v14  ;;  %v456_v17 = vadd.f32 %v455_v12, %v441_v10  ;;  %v374_v20 = vadd.f32 %v373_v19, %v324_v18  ;;  %v444_v14 = vmul.f32 %v936_v28, %v936_v28 }
  0xec   :  { %v418_v21 = vadd.f32 %v417_v16, %v934_v23  ;;  %v457_v22 = vadd.f32 %v456_v17, %v442_v15  ;;  %v721_v24 = vpack.c.bf16 %v374_v20, %v372_v13  ;;  %v446_v23 = vmul.f32 %v369_v46, %v369_v46 }
  0xee   :  { %v458_v25 = vadd.f32 %v457_v22, %v443_v9  ;;  %v419_v26 = vadd.f32 %v418_v21, %v936_v28  ;;  %729 = vst [vmem:[#allocation7 + $0x38] sm:$0xff] %v721_v24   ;;  %v448_v28 = vmul.f32 %v374_v20, %v374_v20 }
  0xef   :  { %484 = dma.vmem_to_hbm [thread:$0]  %s477_s1, 1024, %s479_s5, [#allocation4], %s888_s27, %s888_s27, %s889_s28  }
  0xf0   :  { %v420_v29 = vadd.f32 %v419_v26, %v940_v38  ;;  %v459_v30 = vadd.f32 %v458_v25, %v444_v14 }
  0xf2   :  { %v421_v31 = vadd.f32 %v420_v29, %v369_v46  ;;  %v460_v32 = vadd.f32 %v459_v30, %v445_v27 }
  0xf4   :  { %v422_v33 = vadd.f32 %v421_v31, %v372_v13  ;;  %v461_v35 = vadd.f32 %v460_v32, %v446_v23 }
  0xf6   :  { %v462_v36 = vadd.f32 %v461_v35, %v447_v34  ;;  %v423_v37 = vadd.f32 %v422_v33, %v374_v20 }
  0xf8   :  { %v424_v39 = vrot.slane %v423_v37, 4  ;;  %v463_v40 = vadd.f32 %v462_v36, %v448_v28 }
  0xfa   :  { %v425_v41 = vadd.f32 %v424_v39, %v423_v37  ;;  %v464_v42 = vrot.slane %v463_v40, 4 }
  0xfc   :  { %v426_v43 = vrot.slane %v425_v41, 2  ;;  %v465_v38 = vadd.f32 %v464_v42, %v463_v40 }
  0xfe   :  { %v427_v44 = vadd.f32 %v426_v43, %v425_v41  ;;  %v466_v45 = vrot.slane %v465_v38, 2 }
 0x100   :  { %v428_v47 = vrot.slane %v427_v44, 1  ;;  %v467_v48 = vadd.f32 %v466_v45, %v465_v38 }
 0x102   :  { %v468_v46 = vrot.slane %v467_v48, 1  ;;  %v429_v50 = vadd.f32 %v428_v47, %v427_v44 }
 0x104   :  { %v430_v52 = vadd.f32 %v429_v50, %v408_v49  ;;  %v469_v53 = vadd.f32 %v468_v46, %v467_v48 }
 0x106   :  { %431 = vst [vmem:[#allocation8] sm:$0x1] %v430_v52  ;;  %v470_v54 = vadd.f32 %v469_v53, %v432_v51 }
 0x107   :  { %495 = dma.vmem_to_hbm [thread:$0]  %s491_s6, 16, %s493_s9, [#allocation9]  }
 0x108   :  { %471 = vst [vmem:[#allocation10] sm:$0x1] %v470_v54 }
 0x109   :  { %506 = dma.vmem_to_hbm [thread:$0]  %s502_s11, 16, %s504_s14, [#allocation9]  }
 0x10a   :  { %880 = dma.done.wait [#allocation4], 1024  }
 0x10b   :  { %881 = vsyncadd [#allocation4], 4294966272 }
 0x10c   :  { %882 = dma.done.wait [#allocation9], 32  }
 0x10d   :  { %883 = vsyncadd [#allocation9], 4294967264 }
 0x10e   :  { %519 = vsyncpa [#allocation3], 1 }
 0x10f   :  { %520 = vsyncpa [#allocation6], 1 }
 0x110   :  { %521 = vsyncpa [#allocation4], 1 }
 0x111   :  { %522 = vsyncpa [#allocation9], 1 }

</bundles_post_ra>
